<compile_context>
chip_gen: v7x
topology: tpu7x:2x2x1
jax: 0.10.0
libtpu: 0.0.40
codegen_flags: <defaults>
</compile_context>

<pallas_src>
import functools

import jax
import jax.numpy as jnp
from jax.experimental import pallas as pl
from jax.experimental.pallas import tpu as pltpu


def mlp_kernel(x_ref, w1_ref, b1_ref, w2_ref, b2_ref, w3_ref, b3_ref, o_ref):
    """Linear -> ReLU -> Linear -> ReLU -> Linear, fused in VMEM."""
    w_dtype = w1_ref.dtype
    x = x_ref[...].astype(w_dtype)

    # Matmuls on the MXU with f32 accumulation; bias-add + ReLU stay f32 (VPU).
    h = jnp.dot(x, w1_ref[...], preferred_element_type=jnp.float32)
    h = jnp.maximum(h + b1_ref[...], 0.0)

    h = jnp.dot(h.astype(w_dtype), w2_ref[...], preferred_element_type=jnp.float32)
    h = jnp.maximum(h + b2_ref[...], 0.0)

    out = jnp.dot(h.astype(w_dtype), w3_ref[...], preferred_element_type=jnp.float32)
    out = out + b3_ref[...]
    o_ref[...] = out.astype(o_ref.dtype)


def _round_up(n, m):
    return ((n + m - 1) // m) * m


def _vmem_budget_bytes():
    """~75% of this generation's per-core VMEM (v7x: 48 MiB, v5e/v6e: 96 MiB)."""
    try:
        cap = int(pltpu.get_tpu_info().vmem_capacity_bytes)
    except Exception:  # pragma: no cover - conservative (v7x-sized) fallback
        cap = 64 << 20
    return (cap * 3) // 4


def prepare_params(params, *, weight_dtype=None):
    """One-time pad/cast of the parameters (call OUTSIDE the serving loop).

    Weights are stored [in, out].  Output/hidden feature dims are zero-padded
    to multiples of 128 (lane-dense tiles); w1's INPUT dim is deliberately NOT
    padded so x never needs a padded HBM copy.  Biases become f32 [1, padded].

    Returns (prepared_params, num_classes).
    """
    w1, b1, w2, b2, w3, b3 = params
    in_dim, hidden = w1.shape
    num_classes = w3.shape[1]
    hid_p = _round_up(hidden, 128)
    cls_p = _round_up(num_classes, 128)
    wdt = jnp.dtype(weight_dtype) if weight_dtype is not None else w1.dtype
    f32 = jnp.float32

    def padw(a, rows, cols):
        a = a.astype(wdt)
        return jnp.pad(a, ((0, rows - a.shape[0]), (0, cols - a.shape[1])))

    def padb(b, cols):
        b = jnp.reshape(b, (1, -1)).astype(f32)
        return jnp.pad(b, ((0, 0), (0, cols - b.shape[1])))

    w1p = padw(w1, in_dim, hid_p)      # rows stay at in_dim (matches raw x)
    w2p = padw(w2, hid_p, hid_p)
    w3p = padw(w3, hid_p, cls_p)
    b1p = padb(b1, hid_p)
    b2p = padb(b2, hid_p)
    b3p = padb(b3, cls_p)
    return (w1p, b1p, w2p, b2p, w3p, b3p), num_classes


@functools.partial(
    jax.jit, static_argnames=("num_classes", "batch_tile", "trim_classes"))
def cnn_forward_prepared(x, prepared, *, num_classes, batch_tile=512,
                         trim_classes=True):
    """Fused MLP forward on prepared (padded/cast) params.

    x: [B, in_dim] (f32 or bf16); output dtype follows x's dtype.
    """
    w1p, b1p, w2p, b2p, w3p, b3p = prepared
    B, in_dim = x.shape
    if w1p.shape[0] != in_dim:
        raise ValueError("prepared w1 rows must equal x's feature dim")
    hid_p = w1p.shape[1]
    cls_p = w3p.shape[1]

    # Batch tile: multiple of 8 sublanes.  Cap so the parallel batch grid has
    # >= 2 steps when possible -> v7x can shard it across its 2 TensorCores
    # (negligible extra per-step overhead on v5e/v6e).
    bt = min(int(batch_tile), _round_up(pl.cdiv(B, 2), 8), _round_up(B, 8))
    bt = max(_round_up(bt, 8), 8)
    grid = (pl.cdiv(B, bt),)

    out_dtype = x.dtype
    x_isz = jnp.dtype(x.dtype).itemsize
    o_isz = jnp.dtype(out_dtype).itemsize

    # ---- VMEM footprint: single-buffered params + double-buffered x/out. ---
    param_bytes = sum(int(a.size) * jnp.dtype(a.dtype).itemsize
                      for a in (w1p, b1p, w2p, b2p, w3p, b3p))
    act_tile_bytes = bt * in_dim * x_isz + bt * cls_p * o_isz
    need = param_bytes + 2 * act_tile_bytes + (4 << 20)
    budget = _vmem_budget_bytes()
    if need > budget:
        # TODO(synk): add a hidden-dim (K) reduction grid axis with a VMEM
        # accumulator instead of keeping all weights resident, for very large
        # hidden sizes / small-VMEM parts (v7x).
        raise ValueError(
            f"resident weights ({param_bytes >> 20} MiB) + activation tiles "
            f"exceed the VMEM budget ({budget >> 20} MiB); use bf16 weights, "
            f"a smaller hidden size, or hidden-dim tiling.")
    vmem_limit = int(min(max(need, 16 << 20), budget))

    flops = 2 * B * (in_dim * hid_p + hid_p * hid_p + hid_p * cls_p)
    bytes_accessed = (B * in_dim * x_isz + param_bytes + B * cls_p * o_isz)
    cost = pl.CostEstimate(flops=flops, transcendentals=0,
                           bytes_accessed=bytes_accessed)

    def const_spec(shape):
        # Constant block index across the batch grid -> single-buffer the
        # weights/biases (no re-fetch, half the resident weight VMEM).
        return pl.BlockSpec(shape, lambda i: (0, 0),
                            pipeline_mode=pl.Buffered(1))

    out = pl.pallas_call(
        mlp_kernel,
        out_shape=jax.ShapeDtypeStruct((B, cls_p), out_dtype),
        grid_spec=pltpu.PrefetchScalarGridSpec(
            num_scalar_prefetch=0,
            grid=grid,
            in_specs=[
                # x unpadded in HBM: block = (bt, full in_dim).  The ragged
                # last batch block reads garbage rows; they are masked on the
                # output write and rows are independent, so valid rows are
                # unaffected.
                pl.BlockSpec((bt, in_dim), lambda i: (i, 0)),
                const_spec((in_dim, hid_p)),
                const_spec((1, hid_p)),
                const_spec((hid_p, hid_p)),
                const_spec((1, hid_p)),
                const_spec((hid_p, cls_p)),
                const_spec((1, cls_p)),
            ],
            out_specs=pl.BlockSpec((bt, cls_p), lambda i: (i, 0)),
        ),
        compiler_params=pltpu.CompilerParams(
            dimension_semantics=("parallel",),
            vmem_limit_bytes=vmem_limit,
        ),
        cost_estimate=cost,
    )(x, w1p, b1p, w2p, b2p, w3p, b3p)

    if trim_classes:
        out = out[:, :num_classes]
    return out


def cnn_forward(x, params, *, batch_tile=512, weight_dtype=None,
                trim_classes=True):
    """Convenience wrapper: prepare params then run the fused kernel."""
    prepared, num_classes = prepare_params(params, weight_dtype=weight_dtype)
    return cnn_forward_prepared(x, prepared, num_classes=num_classes,
                                batch_tile=batch_tile,
                                trim_classes=trim_classes)


def init_params(key, input_size, hidden_size, num_classes, dtype=jnp.float32):
    """Deterministic parameter init (PyTorch-Linear-style uniform bounds)."""
    ks = jax.random.split(key, 6)

    def linear(kw, kb, fan_in, fan_out):
        bound = 1.0 / jnp.sqrt(fan_in)
        w = jax.random.uniform(kw, (fan_in, fan_out), dtype, -bound, bound)
        b = jax.random.uniform(kb, (1, fan_out), dtype, -bound, bound)
        return w, b

    w1, b1 = linear(ks[0], ks[1], input_size, hidden_size)
    w2, b2 = linear(ks[2], ks[3], hidden_size, hidden_size)
    w3, b3 = linear(ks[4], ks[5], hidden_size, num_classes)
    return (w1, b1, w2, b2, w3, b3)


def reference_forward(x, params):
    w1, b1, w2, b2, w3, b3 = params
    h = jnp.maximum(x @ w1 + b1, 0.0)
    h = jnp.maximum(h @ w2 + b2, 0.0)
    return h @ w3 + b3


if __name__ == "__main__":
    # Small shapes consistent with the module's forward (x: [B, input_size]
    # -> logits: [B, num_classes]); hidden_size=100 matches the module.
    # batch=50 is deliberately not a multiple of the batch tile so the
    # ragged-last-block path is exercised.
    batch, input_size, hidden_size, num_classes = 50, 64, 100, 5

    key = jax.random.PRNGKey(0)
    k_x, k_p = jax.random.split(key)
    x = jax.random.normal(k_x, (batch, input_size), jnp.float32)
    params = init_params(k_p, input_size, hidden_size, num_classes)
    ref = reference_forward(x, params)

    # f32 path: params prepared once (outside the hot loop); batch_tile=16 ->
    # grid=(4,) exercises the pipelined, megacore-shardable path.
    prep_f32, ncls = prepare_params(params)
    out = cnn_forward_prepared(x, prep_f32, num_classes=ncls, batch_tile=16)
    out = jax.block_until_ready(out)
    assert out.shape == (batch, num_classes)
    assert jnp.allclose(out, ref, atol=2e-5, rtol=2e-5)

    # Default (larger) batch tile: bt is capped so grid has >= 2 steps.
    out2 = jax.block_until_ready(
        cnn_forward_prepared(x, prep_f32, num_classes=ncls))
    assert jnp.allclose(out2, ref, atol=2e-5, rtol=2e-5)

    # bf16-weight path (recommended on v5e/v6e/v7x): bf16 MXU matmuls with
    # f32 accumulation; bias-add / ReLU stay f32 on the VPU.
    prep_bf16, _ = prepare_params(params, weight_dtype=jnp.bfloat16)
    out_bf16w = jax.block_until_ready(
        cnn_forward_prepared(x, prep_bf16, num_classes=ncls, batch_tile=16))
    assert out_bf16w.shape == (batch, num_classes)
    assert jnp.allclose(out_bf16w, ref, atol=0.1, rtol=0.1)

    # bf16 activations arriving from upstream -> bf16 output (halves the
    # activation HBM traffic); no wrapper-side cast is inserted.
    x_bf16 = x.astype(jnp.bfloat16)
    out_bf16io = jax.block_until_ready(
        cnn_forward_prepared(x_bf16, prep_bf16, num_classes=ncls,
                             batch_tile=16))
    assert out_bf16io.dtype == jnp.bfloat16
    out_bf16io_f32 = out_bf16io.astype(jnp.float32)
    assert bool(jnp.all(jnp.isfinite(out_bf16io_f32)))
    assert jnp.allclose(out_bf16io_f32, ref, atol=0.2, rtol=0.2)

    print("KERNEL_OK")
</pallas_src>

<mosaic_0001>
module attributes {stable_mosaic.version = 11 : i64} {
  func.func @mlp_kernel(%arg0: i32, %arg1: memref<16x64xf32, #tpu.memory_space<vmem>>, %arg2: memref<64x128xf32, #tpu.memory_space<vmem>>, %arg3: memref<1x128xf32, #tpu.memory_space<vmem>>, %arg4: memref<128x128xf32, #tpu.memory_space<vmem>>, %arg5: memref<1x128xf32, #tpu.memory_space<vmem>>, %arg6: memref<128x128xf32, #tpu.memory_space<vmem>>, %arg7: memref<1x128xf32, #tpu.memory_space<vmem>>, %arg8: memref<16x128xf32, #tpu.memory_space<vmem>>) attributes {dimension_semantics = [#tpu.dimension_semantics<parallel>], iteration_bounds = array<i64: 4>, scalar_prefetch = 0 : i64, scratch_operands = 0 : i64, tpu.core_type = #tpu.core_type<tc>, window_params = [{transform_indices = @transform_0, window_bounds = array<i64: 16, 64>}, {pipeline_mode = #tpu.pipeline_mode<synchronous>, transform_indices = @transform_1, window_bounds = array<i64: 64, 128>}, {pipeline_mode = #tpu.pipeline_mode<synchronous>, transform_indices = @transform_2, window_bounds = array<i64: 1, 128>}, {pipeline_mode = #tpu.pipeline_mode<synchronous>, transform_indices = @transform_3, window_bounds = array<i64: 128, 128>}, {pipeline_mode = #tpu.pipeline_mode<synchronous>, transform_indices = @transform_4, window_bounds = array<i64: 1, 128>}, {pipeline_mode = #tpu.pipeline_mode<synchronous>, transform_indices = @transform_5, window_bounds = array<i64: 128, 128>}, {pipeline_mode = #tpu.pipeline_mode<synchronous>, transform_indices = @transform_6, window_bounds = array<i64: 1, 128>}, {transform_indices = @transform_7, window_bounds = array<i64: 16, 128>}]} {
    %c0 = arith.constant 0 : index
    %c0_0 = arith.constant 0 : index
    %0 = vector.load %arg1[%c0, %c0_0] : memref<16x64xf32, #tpu.memory_space<vmem>>, vector<16x64xf32>
    %c0_1 = arith.constant 0 : index
    %c0_2 = arith.constant 0 : index
    %1 = vector.load %arg2[%c0_1, %c0_2] : memref<64x128xf32, #tpu.memory_space<vmem>>, vector<64x128xf32>
    %cst = arith.constant dense<0.000000e+00> : vector<16x128xf32>
    %2 = tpu.matmul %0, %1, %cst {dimension_numbers = #tpu.dot_dimension_numbers<[1], [0], [0], [1], [0, 0, 1, 1], [], []>} : vector<16x64xf32>, vector<64x128xf32>, vector<16x128xf32> -> vector<16x128xf32>
    %c0_3 = arith.constant 0 : index
    %c0_4 = arith.constant 0 : index
    %3 = vector.load %arg3[%c0_3, %c0_4] : memref<1x128xf32, #tpu.memory_space<vmem>>, vector<1x128xf32>
    %4 = vector.broadcast %3 : vector<1x128xf32> to vector<16x128xf32>
    %5 = arith.addf %2, %4 : vector<16x128xf32>
    %cst_5 = arith.constant 0.000000e+00 : f32
    %6 = vector.broadcast %cst_5 : f32 to vector<16x128xf32>
    %7 = arith.maximumf %5, %6 : vector<16x128xf32>
    %c0_6 = arith.constant 0 : index
    %c0_7 = arith.constant 0 : index
    %8 = vector.load %arg4[%c0_6, %c0_7] : memref<128x128xf32, #tpu.memory_space<vmem>>, vector<128x128xf32>
    %cst_8 = arith.constant dense<0.000000e+00> : vector<16x128xf32>
    %9 = tpu.matmul %7, %8, %cst_8 {dimension_numbers = #tpu.dot_dimension_numbers<[1], [0], [0], [1], [0, 0, 1, 1], [], []>} : vector<16x128xf32>, vector<128x128xf32>, vector<16x128xf32> -> vector<16x128xf32>
    %c0_9 = arith.constant 0 : index
    %c0_10 = arith.constant 0 : index
    %10 = vector.load %arg5[%c0_9, %c0_10] : memref<1x128xf32, #tpu.memory_space<vmem>>, vector<1x128xf32>
    %11 = vector.broadcast %10 : vector<1x128xf32> to vector<16x128xf32>
    %12 = arith.addf %9, %11 : vector<16x128xf32>
    %cst_11 = arith.constant 0.000000e+00 : f32
    %13 = vector.broadcast %cst_11 : f32 to vector<16x128xf32>
    %14 = arith.maximumf %12, %13 : vector<16x128xf32>
    %c0_12 = arith.constant 0 : index
    %c0_13 = arith.constant 0 : index
    %15 = vector.load %arg6[%c0_12, %c0_13] : memref<128x128xf32, #tpu.memory_space<vmem>>, vector<128x128xf32>
    %cst_14 = arith.constant dense<0.000000e+00> : vector<16x128xf32>
    %16 = tpu.matmul %14, %15, %cst_14 {dimension_numbers = #tpu.dot_dimension_numbers<[1], [0], [0], [1], [0, 0, 1, 1], [], []>} : vector<16x128xf32>, vector<128x128xf32>, vector<16x128xf32> -> vector<16x128xf32>
    %c0_15 = arith.constant 0 : index
    %c0_16 = arith.constant 0 : index
    %17 = vector.load %arg7[%c0_15, %c0_16] : memref<1x128xf32, #tpu.memory_space<vmem>>, vector<1x128xf32>
    %18 = vector.broadcast %17 : vector<1x128xf32> to vector<16x128xf32>
    %19 = arith.addf %16, %18 : vector<16x128xf32>
    %c0_17 = arith.constant 0 : index
    %c0_18 = arith.constant 0 : index
    %20 = vector.load %arg8[%c0_17, %c0_18] : memref<16x128xf32, #tpu.memory_space<vmem>>, vector<16x128xf32>
    tpu.vector_store %arg8[%c0_17, %c0_18], %19 {strides = array<i32>} : memref<16x128xf32, #tpu.memory_space<vmem>>, vector<16x128xf32>,
    return
  }
  func.func @transform_0(%arg0: i32) -> (i32, i32) {
    %c0_i32 = arith.constant 0 : i32
    %c0_i32_0 = arith.constant 0 : i32
    return %arg0, %c0_i32 : i32, i32
  }
  func.func @transform_1(%arg0: i32) -> (i32, i32) {
    %c0_i32 = arith.constant 0 : i32
    %c0_i32_0 = arith.constant 0 : i32
    %c0_i32_1 = arith.constant 0 : i32
    return %c0_i32, %c0_i32_0 : i32, i32
  }
  func.func @transform_2(%arg0: i32) -> (i32, i32) {
    %c0_i32 = arith.constant 0 : i32
    %c0_i32_0 = arith.constant 0 : i32
    %c0_i32_1 = arith.constant 0 : i32
    return %c0_i32, %c0_i32_0 : i32, i32
  }
  func.func @transform_3(%arg0: i32) -> (i32, i32) {
    %c0_i32 = arith.constant 0 : i32
    %c0_i32_0 = arith.constant 0 : i32
    %c0_i32_1 = arith.constant 0 : i32
    return %c0_i32, %c0_i32_0 : i32, i32
  }
  func.func @transform_4(%arg0: i32) -> (i32, i32) {
    %c0_i32 = arith.constant 0 : i32
    %c0_i32_0 = arith.constant 0 : i32
    %c0_i32_1 = arith.constant 0 : i32
    return %c0_i32, %c0_i32_0 : i32, i32
  }
  func.func @transform_5(%arg0: i32) -> (i32, i32) {
    %c0_i32 = arith.constant 0 : i32
    %c0_i32_0 = arith.constant 0 : i32
    %c0_i32_1 = arith.constant 0 : i32
    return %c0_i32, %c0_i32_0 : i32, i32
  }
  func.func @transform_6(%arg0: i32) -> (i32, i32) {
    %c0_i32 = arith.constant 0 : i32
    %c0_i32_0 = arith.constant 0 : i32
    %c0_i32_1 = arith.constant 0 : i32
    return %c0_i32, %c0_i32_0 : i32, i32
  }
  func.func @transform_7(%arg0: i32) -> (i32, i32) {
    %c0_i32 = arith.constant 0 : i32
    %c0_i32_0 = arith.constant 0 : i32
    return %arg0, %c0_i32 : i32, i32
  }
}

</mosaic_0001>

<bundles_post_ra>
// kernel: cnn_forward_prepared.1
= control target key start
LH: loop header
LB: loop body
LE: loop exit
PB: predicated region body
PF: predicated region fallthrough
CT: control target
= control target key end

     0   :  { %s1850_s0 = inlined_call_operand.hbm [shape: f32[50,64], index: 0, kind: input, shape index: {}]   ;;  %s1851_s1 = inlined_call_operand.hbm [shape: f32[64,128], index: 1, kind: input, shape index: {}]   ;;  %s1852_s2 = inlined_call_operand.vmem [shape: f32[1,128], index: 2, kind: input, shape index: {}]   ;;  %s1853_s3 = inlined_call_operand.hbm [shape: f32[128,128], index: 3, kind: input, shape index: {}]   ;;  %s1854_s4 = inlined_call_operand.vmem [shape: f32[1,128], index: 4, kind: input, shape index: {}]   ;;  %s1855_s5 = inlined_call_operand.hbm [shape: f32[128,128], index: 5, kind: input, shape index: {}]   ;;  %s1856_s6 = inlined_call_operand.vmem [shape: f32[1,128], index: 6, kind: input, shape index: {}]   ;;  %s1857_s7 = inlined_call_operand.vmem [shape: f32[50,128], index: 7, kind: output, shape index: {}]  }
   0x1   :  { %1863 = sst [smem:[#allocation15_spill]] %s1857_s7 }
   0x2   :  { %12 = vsyncpa [#allocation3], 0 }
   0x3   :  { %14 = vsyncpa [#allocation3 + $0x1], 0 }
   0x4   :  { %15 = vsyncpa [#allocation5], 0 }
   0x5   :  { %16 = vsyncpa [#allocation8], 0  ;;  %s1573_s24 = smov 0   ;;  %s1575_s25 = smov 0  }
   0x6   :  { %s1577_s26 = smov 0   ;;  %s1579_s27 = smov 0  }
   0x7 LB: > { %s1592_s28 = sadd.s32 4294967295, %s1491_s27   ;;  %s1595_s29 = sadd.s32 1, %s1491_s27   ;;  %s1491_s27 = sphi %s1579_s27, %s1881_s27   ;;  %s1487_s26 = sphi %s1577_s26, %s1885_s26   ;;  %s1483_s25 = sphi %s1575_s25, %s1884_s25   ;;  %s1479_s24 = sphi %s1573_s24, %s1883_s24  }
   0x8   : > { %1864 = sst [smem:[#allocation13_spill]] %s1595_s29  ;;  %s26_s30 = ssub.s32 %s1491_s27, %s1595_s29 }
   0x9   : > { %s29_s8 = sadd.s32 1, %s1487_s26  ;;  %p27_p0 = scmp.eq.s32.totalorder %s26_s30, 0 }
   0xa   : > { %p36_p1 = scmp.ne.s32.totalorder %s1487_s26, %s1483_s25  ;;  %p37_p2 = scmp.eq.s32.totalorder %s1491_s27, 0 }
   0xb   : > { %p42_p3 = scmp.ne.s32.totalorder %s1483_s25, %s1479_s24  ;;  %p1858_p5 = scmp.eq.s32.totalorder %s1592_s28, 0 }
   0xc   : > { %s1605_s9 = scalar_select %p27_p0, %s1487_s26, %s29_s8  }
   0xd   : > { %p1607_p4 = por %p37_p2, %p36_p1  ;;  %p192_p6 = scmp.eq.s32.totalorder %s1592_s28, 3 }
   0xe   : > { %1865 = sst [smem:[#allocation14_spill]] %s1605_s9  ;;  %p914_p7 = scmp.ge.s32.totalorder %s1491_s27, 1 }
   0xf   : > { %s1866_s10 = scalar_select %p1607_p4, 1, 0 }
  0x10   : > { %p1616_p8 = por %p1858_p5, %p42_p3  ;;  %p205_p9 = scmp.lt.s32.totalorder %s1491_s27, 5 }
  0x11   : > { %p1621_p10 = por %p192_p6, %p36_p1  ;;  %s1525_s14 = smov [#allocation4]  }
  0x12   : > { %s1867_s11 = scalar_select %p1616_p8, 1, 0 }
  0x13   : > { %s1868_s12 = scalar_select %p1621_p10, 1, 0 }
  0x14   : > { %p1625_p11 = pnand %p914_p7, %p205_p9  ;;  %s217_s15 = sshll.u32 %s1525_s14, 4  ;;  %s1631_s15 = int_to_ptr.vmem [resolvable:$true] %s217_s15 }
  0x15   : > { %s1526_s17 = smov [#allocation6]   ;;  %s1527_s19 = smov [#allocation7]  }
  0x16   : > { %s1869_s13 = scalar_select %p1625_p11, 1, 0 }
  0x17   : > { %p1186_p12 = pneg %p1625_p11  ;;  %s233_s18 = sshll.u32 %s1526_s17, 4  ;;  %s1639_s18 = int_to_ptr.vmem [resolvable:$true] %s233_s18 }
  0x18   : > { %s1641_s20 = sshll.u32 %s1527_s19, 4  ;;  %s1305_s23 = scalar_lea.hbm %s1851_s1, 1024  ;;  %s250_s20 = int_to_ptr.vmem [resolvable:$true] %s1641_s20 }
  0x19   : > { %p1635_p13 = pnand %p1186_p12, %p1858_p5  ;;  %p1306_p0 = scmp.ne.s32.totalorder %s1851_s1, %s1305_s23 }
  0x1a   : > { %p1312_p6 = scmp.lt.u32.totalorder %s1305_s23, %s1851_s1 }
  0x1b   : > { %p1651_p1 = pneg %p1635_p13 }
  0x1d   : > { %p1308_p2 = pnand %p1651_p1, %p1306_p0 }
  0x1f   : > { %p1309_p3 = pneg %p1308_p2 }
  0x21   : > { %p1314_p7 = pnand %p1312_p6, %p1309_p3 }
  0x23   : > { %1317 = shalt.err (!%p1314_p7)
}
  0x24   : > { %s1318_s19 = scalar_lea.vmem %s1631_s15, 1024  ;;  %p1326_p10 = scmp.lt.s32.totalorder %s1631_s15, %s1631_s15 }
  0x25   : > { %p1319_p9 = scmp.ne.s32.totalorder %s1631_s15, %s1318_s19  ;;  %p1327_p8 = scmp.lt.s32.totalorder %s1318_s19, %s1318_s19 }
  0x27   : > { %p1321_p12 = pnand %p1319_p9, %p1651_p1  ;;  %p1328_p0 = por %p1327_p8, %p1326_p10 }
  0x29   : > { %p1322_p5 = pneg %p1321_p12 }
  0x2b   : > { %p1329_p2 = pnand %p1328_p0, %p1322_p5 }
  0x2d   : > { %1332 = shalt.err (!%p1329_p2)
}
  0x2e   : > { %s1528_s21 = smov 128   ;;  %s1529_s22 = smov 8  }
  0x2f   : > { %1189 = dma.hbm_to_vmem [thread:$0]  (!%p1635_p13), %s1851_s1, 1024, %s1631_s15, [#allocation5], %s1528_s21, %s1528_s21, %s1529_s22  }
  0x30   : > { %s1333_s17 = scalar_lea.hbm %s1853_s3, 2048 }
  0x31   : > { %p1334_p5 = scmp.ne.s32.totalorder %s1853_s3, %s1333_s17  ;;  %p1340_p3 = scmp.lt.u32.totalorder %s1333_s17, %s1853_s3 }
  0x33   : > { %p1336_p8 = pnand %p1334_p5, %p1651_p1 }
  0x35   : > { %p1337_p10 = pneg %p1336_p8 }
  0x37   : > { %p1342_p6 = pnand %p1340_p3, %p1337_p10 }
  0x39   : > { %1345 = shalt.err (!%p1342_p6)
}
  0x3a   : > { %s1346_s15 = scalar_lea.vmem %s1639_s18, 2048  ;;  %p1354_p0 = scmp.lt.s32.totalorder %s1639_s18, %s1639_s18 }
  0x3b   : > { %p1347_p7 = scmp.ne.s32.totalorder %s1639_s18, %s1346_s15  ;;  %p1355_p2 = scmp.lt.s32.totalorder %s1346_s15, %s1346_s15 }
  0x3d   : > { %p1349_p9 = pnand %p1347_p7, %p1651_p1  ;;  %p1356_p5 = por %p1355_p2, %p1354_p0 }
  0x3f   : > { %p1350_p12 = pneg %p1349_p9 }
  0x41   : > { %p1357_p8 = pnand %p1356_p5, %p1350_p12 }
  0x43   : > { %1360 = shalt.err (!%p1357_p8)
}
  0x44   : > { %1192 = dma.hbm_to_vmem [thread:$0]  (!%p1635_p13), %s1853_s3, 2048, %s1639_s18, [#allocation5], %s1528_s21, %s1528_s21, %s1529_s22  }
  0x45   : > { %s1361_s24 = scalar_lea.hbm %s1855_s5, 2048 }
  0x46   : > { %p1362_p10 = scmp.ne.s32.totalorder %s1855_s5, %s1361_s24  ;;  %p1368_p7 = scmp.lt.u32.totalorder %s1361_s24, %s1855_s5 }
  0x48   : > { %p1364_p3 = pnand %p1362_p10, %p1651_p1 }
  0x4a   : > { %p1365_p6 = pneg %p1364_p3 }
  0x4c   : > { %p1370_p9 = pnand %p1368_p7, %p1365_p6 }
  0x4e   : > { %1373 = shalt.err (!%p1370_p9)
}
  0x4f   : > { %s1374_s15 = scalar_lea.vmem %s250_s20, 2048  ;;  %p1382_p5 = scmp.lt.s32.totalorder %s250_s20, %s250_s20 }
  0x50   : > { %p1375_p12 = scmp.ne.s32.totalorder %s250_s20, %s1374_s15  ;;  %p1383_p8 = scmp.lt.s32.totalorder %s1374_s15, %s1374_s15 }
  0x52   : > { %p1377_p0 = pnand %p1375_p12, %p1651_p1  ;;  %p1384_p11 = por %p1383_p8, %p1382_p5 }
  0x54   : > { %p1378_p2 = pneg %p1377_p0 }
  0x56   : > { %p1385_p4 = pnand %p1384_p11, %p1378_p2 }
  0x58   : > { %1388 = shalt.err (!%p1385_p4)
}
  0x59   : > { %1195 = dma.hbm_to_vmem [thread:$0]  (!%p1635_p13), %s1855_s5, 2048, %s250_s20, [#allocation8], %s1528_s21, %s1528_s21, %s1529_s22  }
  0x5a   : > { %p918_p10 = scmp.ge.s32.totalorder %s1491_s27, 4 }
  0x5b   : > { %p1872_p1 = scmp.ne.s32.totalorder (!%p918_p10), %s1866_s10, 0 }
  0x5c   : > { %262 = sbr.rel (%p918_p10) target bundleno = 134 (0x86), region = 40 }
  0x63   : > { %265 = sbr.rel (!%p1872_p1) target bundleno = 134 (0x86), region = 44  ;;  %s266_s8 = sand.u32 (%p1872_p1), 1, %s1487_s26  }
  0x64   : > { %s920_s29 = sshll.u32 (%p1872_p1), %s1491_s27, 1  ;;  %s919_s9 = sshll.u32 (%p1872_p1), %s266_s8, 4 }
  0x65   : > { %s272_s23 = ssub.s32 (%p1872_p1), 7, %s920_s29  ;;  %s1731_s30 = scalar_lea.sflag (%p1872_p1), [#allocation3], %s266_s8 }
  0x66   : > { %p273_p4 = scmp.lt.s32.totalorder (%p1872_p1), %s272_s23, 2  ;;  %s270_s20 = scalar_lea.vmem (%p1872_p1), [#allocation2], %s919_s9 }
  0x6a   : > { %s1887_s23 = smov (!%p273_p4, %s272_s23), 2 }
  0x6b   : > { %s1728_s16 = sshll.u32 %s1887_s23, 7 }
  0x6c   : > { %s277_s24 = ssub.s32 256, %s1728_s16 }
  0x6d   : > { %278 = vsyncadd %s1731_s30, %s277_s24  ;;  %p922_p11 = scmp.ne.s32.totalorder %s1728_s16, 0  ;;  %s954_s10 = sshll.u32 %s1491_s27, 8 }
  0x6e   : > { %s1739_s14 = scalar_lea.hbm %s1850_s0, %s954_s10  ;;  %s283_s17 = sshll.u32 %s270_s20, 4  ;;  %s1741_s17 = int_to_ptr.vmem [resolvable:$true] %s283_s17 }
  0x6f   : > { %s1389_s19 = scalar_lea.hbm %s1739_s14, %s1728_s16  ;;  %s1393_s27 = scalar_lea.hbm %s1850_s0, 896 }
  0x70   : > { %p1390_p13 = scmp.ne.s32.totalorder %s1739_s14, %s1389_s19  ;;  %p1394_p7 = scmp.lt.u32.totalorder %s1739_s14, %s1850_s0 }
  0x71   : > { %p1395_p9 = scmp.lt.u32.totalorder %s1393_s27, %s1389_s19  ;;  %p1397_p0 = scmp.lt.u32.totalorder %s1389_s19, %s1739_s14 }
  0x72   : > { %p1391_p3 = pnand %p1390_p13, %p922_p11 }
  0x73   : > { %p1396_p12 = por %p1395_p9, %p1394_p7 }
  0x74   : > { %p1392_p6 = pneg %p1391_p3 }
  0x75   : > { %p1398_p2 = por %p1397_p0, %p1396_p12 }
  0x77   : > { %p1399_p5 = pnand %p1398_p2, %p1392_p6 }
  0x79   : > { %1402 = shalt.err (!%p1399_p5)
}
  0x7a   : > { %s1403_s29 = scalar_lea.vmem %s1741_s17, %s1728_s16  ;;  %s1530_s9 = smov [#allocation2]  }
  0x7b   : > { %p1404_p8 = scmp.ne.s32.totalorder %s1741_s17, %s1403_s29  ;;  %s1407_s23 = sshll.u32 %s1530_s9, 4  ;;  %s1408_s23 = int_to_ptr.vmem [resolvable:$false] %s1407_s23 }
  0x7c   : > { %s1409_s24 = scalar_lea.vmem %s1408_s23, 512  ;;  %p1410_p4 = scmp.lt.s32.totalorder %s1741_s17, %s1408_s23 }
  0x7d   : > { %p1405_p10 = pnand %p1404_p8, %p922_p11  ;;  %p1411_p13 = scmp.lt.s32.totalorder %s1409_s24, %s1403_s29 }
  0x7f   : > { %p1406_p1 = pneg %p1405_p10  ;;  %p1412_p3 = por %p1411_p13, %p1410_p4 }
  0x81   : > { %p1413_p7 = pnand %p1412_p3, %p1406_p1 }
  0x83   : > { %1416 = shalt.err (!%p1413_p7)
}
  0x84   : > { %s1531_s20 = smov 128   ;;  %s1532_s10 = smov 8  }
  0x85   : > { %289 = dma.hbm_to_vmem [thread:$0]  (%p922_p11), %s1739_s14, %s1728_s16, %s1741_s17, %s1731_s30, %s1531_s20, %s1531_s20, %s1532_s10  }
  0x86 PF: > { %p1873_p6 = scmp.ne.s32.totalorder %s1869_s13, 0 }
  0x87   : > { %s297_s21 = sand.u32 (!%p1873_p6), 1, %s1483_s25   ;;  %p1874_p9 = scmp.ne.s32.totalorder (!%p1873_p6), %s1867_s11, 0 }
  0x88   : > { %295 = sbr.rel (%p1873_p6) target bundleno = 870 (0x366), region = 48  ;;  %s1771_s22 = sshll.u32 (!%p1873_p6), %s297_s21, 4 }
  0x89   : > { %s298_s19 = scalar_lea.sflag (!%p1873_p6), [#allocation3], %s297_s21  ;;  %s301_s15 = scalar_lea.vmem (!%p1873_p6), [#allocation2], %s1771_s22 }
  0x8f   : > { %1466 = dma.done.wait (%p1874_p9), %s298_s19, 256  }
  0x90   : > { %1468 = vsyncadd (%p1874_p9), %s298_s19, 4294967040  ;;  %p1875_p11 = scmp.eq.s32.totalorder %s1592_s28, 0 }
  0x92   : > { %1470 = dma.done.wait (%p1875_p11), [#allocation5], 3072   ;;  %p1876_p12 = pmov %p1875_p11 }
  0x93   : > { %p1877_p0 = pmov %p1875_p11 }
  0x94   : > { %1472 = vsyncadd (%p1876_p12), [#allocation5], 4294964224 }
  0x95   : > { %1474 = dma.done.wait (%p1877_p0), [#allocation8], 2048   ;;  %p1878_p2 = pmov %p1877_p0 }
  0x96   : > { %v355_v0 = vld [vmem:[#allocation4] sm:$0xff]  ;;  %v356_v1 = vld [vmem:[#allocation4 + $0x8] sm:$0xff]  ;;  %v357_v2 = vld [vmem:[#allocation4 + $0x10] sm:$0xff]  ;;  %vm370_vm0 = vcmask 523264   ;;  %s1802_s18 = scalar_lea.vmem [#allocation9], %s1771_s22   ;;  %p1879_p5 = scmp.ne.s32.totalorder %s1868_s12, 0 }
  0x97   : > { %1476 = vsyncadd (%p1878_p2), [#allocation8], 4294965248  ;;  %v1093_v3 = vpack.c.bf16 %v356_v1, %v355_v0  ;;  %v358_v4 = vld [vmem:[#allocation4 + $0x18] sm:$0xff]  ;;  %v359_v6 = vld [vmem:[#allocation4 + $0x20] sm:$0xff]  ;;  %s938_s27 = sshll.u32 (%p1879_p5), %s1592_s28, 1  ;;  %s955_s7 = sshll.u32 (%p1879_p5), %s1592_s28, 4 }
  0x98   : > { %v1097_v5 = vpack.c.bf16 %v358_v4, %v357_v2  ;;  %v360_v7 = vld [vmem:[#allocation4 + $0x28] sm:$0xff]  ;;  %v353_v8 = vld [vmem:[%s301_s15] sm:$0xff]  ;;  %v457_v13 = vld [vmem:[#allocation6 + $0x18] sm:$0xff]  ;;  %s662_s8 = ssub.s32 (%p1879_p5), 7, %s938_s27  ;;  %s1880_s23 = sld [smem:[#allocation15_spill]] (%p1879_p5) }
  0x99   : > { %1094 = vmatprep.subr.bf16.mxu0 %v1093_v3  ;;  %1020 = vmatprep.mubr.msk.f32.mxu0 %vm370_vm0, %v353_v8  ;;  %v454_v9 = vld [vmem:[#allocation6] sm:$0xff]  ;;  %v455_v10 = vld [vmem:[#allocation6 + $0x8] sm:$0xff]  ;;  %v456_v12 = vld [vmem:[#allocation6 + $0x10] sm:$0xff]  ;;  %v1101_v14 = vpack.c.bf16 %v360_v7, %v359_v6  ;;  %p663_p8 = scmp.lt.s32.totalorder (%p1879_p5), %s662_s8, 2 }
  0x9a   : > { %1096 = vmatpush3.bf16.msra.mxu0 %v1093_v3  ;;  %v1109_v11 = vpack.c.bf16 %v455_v10, %v454_v9  ;;  %v1113_v15 = vpack.c.bf16 %v457_v13, %v456_v12  ;;  %v458_v16 = vld [vmem:[#allocation6 + $0x20] sm:$0xff]  ;;  %v459_v17 = vld [vmem:[#allocation6 + $0x28] sm:$0xff]  ;;  %v361_v18 = vld [vmem:[#allocation4 + $0x30] sm:$0xff] }
  0x9b   : > { %1098 = vmatprep.subr.bf16.mxu0 %v1097_v5  ;;  %v362_v19 = vld [vmem:[#allocation4 + $0x38] sm:$0xff]  ;;  %v1117_v20 = vpack.c.bf16 %v459_v17, %v458_v16  ;;  %v460_v22 = vld [vmem:[#allocation6 + $0x30] sm:$0xff]  ;;  %v462_v25 = vld [vmem:[#allocation6 + $0x40] sm:$0xff] }
  0x9c   : > { %1110 = vmatprep.subr.bf16.mxu1 %v1109_v11  ;;  %v1105_v21 = vpack.c.bf16 %v362_v19, %v361_v18  ;;  %v461_v23 = vld [vmem:[#allocation6 + $0x38] sm:$0xff]  ;;  %v463_v26 = vld [vmem:[#allocation6 + $0x48] sm:$0xff]  ;;  %v464_v29 = vld [vmem:[#allocation6 + $0x50] sm:$0xff] }
  0x9d   : > { %1112 = vmatpush3.bf16.msra.mxu1 %v1109_v11  ;;  %v1121_v24 = vpack.c.bf16 %v461_v23, %v460_v22  ;;  %v354_v27 = vld [vmem:[%s301_s15 + $0x8] sm:$0xff]  ;;  %v1125_v28 = vpack.c.bf16 %v463_v26, %v462_v25  ;;  %v466_v32 = vld [vmem:[#allocation6 + $0x60] sm:$0xff]  ;;  %v468_v35 = vld [vmem:[#allocation6 + $0x70] sm:$0xff] }
  0x9e   : > { %1100 = vmatpush3.bf16.msra.mxu0 %v1097_v5  ;;  %1114 = vmatprep.subr.bf16.mxu1 %v1113_v15  ;;  %v465_v30 = vld [vmem:[#allocation6 + $0x58] sm:$0xff]  ;;  %v467_v33 = vld [vmem:[#allocation6 + $0x68] sm:$0xff]  ;;  %v554_v38 = vld [vmem:[#allocation7] sm:$0xff]  ;;  %s1813_s24 = scalar_lea.vmem (%p1879_p5), %s1880_s23, %s955_s7  }
  0x9f   : > { %1102 = vmatprep.subr.bf16.mxu0 %v1101_v14  ;;  %v1129_v31 = vpack.c.bf16 %v465_v30, %v464_v29  ;;  %v1133_v34 = vpack.c.bf16 %v467_v33, %v466_v32  ;;  %v469_v36 = vld [vmem:[#allocation6 + $0x78] sm:$0xff]  ;;  %v555_v39 = vld [vmem:[#allocation7 + $0x8] sm:$0xff]  ;;  %v556_v40 = vld [vmem:[#allocation7 + $0x10] sm:$0xff] }
  0xa0   : > { %v1137_v37 = vpack.c.bf16 %v469_v36, %v468_v35  ;;  %v1141_v41 = vpack.c.bf16 %v555_v39, %v554_v38  ;;  %v557_v42 = vld [vmem:[#allocation7 + $0x18] sm:$0xff]  ;;  %v558_v44 = vld [vmem:[#allocation7 + $0x20] sm:$0xff]  ;;  %v559_v45 = vld [vmem:[#allocation7 + $0x28] sm:$0xff] }
  0xa1   : > { %1116 = vmatpush3.bf16.msra.mxu1 %v1113_v15  ;;  %v1145_v43 = vpack.c.bf16 %v557_v42, %v556_v40  ;;  %v1149_v46 = vpack.c.bf16 %v559_v45, %v558_v44  ;;  %v560_v47 = vld [vmem:[#allocation7 + $0x30] sm:$0xff]  ;;  %v561_v48 = vld [vmem:[#allocation7 + $0x38] sm:$0xff]  ;;  %v562_v50 = vld [vmem:[#allocation7 + $0x40] sm:$0xff] }
  0xa2   : > { %1104 = vmatpush3.bf16.msra.mxu0 %v1101_v14  ;;  %1118 = vmatprep.subr.bf16.mxu1 %v1117_v20  ;;  %v1153_v49 = vpack.c.bf16 %v561_v48, %v560_v47  ;;  %v563_v51 = vld [vmem:[#allocation7 + $0x48] sm:$0xff]  ;;  %v564_v53 = vld [vmem:[#allocation7 + $0x50] sm:$0xff]  ;;  %v565_v54 = vld [vmem:[#allocation7 + $0x58] sm:$0xff] }
  0xa3   : > { %1106 = vmatprep.subr.bf16.mxu0 %v1105_v21  ;;  %v1157_v52 = vpack.c.bf16 %v563_v51, %v562_v50  ;;  %v1161_v55 = vpack.c.bf16 %v565_v54, %v564_v53  ;;  %v566_v56 = vld [vmem:[#allocation7 + $0x60] sm:$0xff]  ;;  %v567_v57 = vld [vmem:[#allocation7 + $0x68] sm:$0xff]  ;;  %v568_v2 = vld [vmem:[#allocation7 + $0x70] sm:$0xff] }
  0xa4   : > { %v1165_v58 = vpack.c.bf16 %v567_v57, %v566_v56  ;;  %v932_v59 = vld [vmem:[%s1852_s2] ss:$0 sm:$0xff]  ;;  %v569_v3 = vld [vmem:[#allocation7 + $0x78] sm:$0xff] }
  0xa5   : > { %1120 = vmatpush3.bf16.msra.mxu1 %v1117_v20  ;;  %v1169_v4 = vpack.c.bf16 %v569_v3, %v568_v2  ;;  %v935_v5 = vld [vmem:[%s1854_s4] ss:$0 sm:$0xff] }
  0xa6   : > { %1108 = vmatpush3.bf16.msra.mxu0 %v1105_v21  ;;  %1122 = vmatprep.subr.bf16.mxu1 %v1121_v24  ;;  %v936_v12 = vld [vmem:[%s1856_s6] ss:$0 sm:$0xff] }
  0xa7   : > { %1142 = vmatprep.subr.bf16.mxu0 %v1141_v41 }
  0xa9   : > { %1021 = vmatmul.mubr.msk.f32.vlgmr.msra.gmra.mrb[0].mxu0 %vm370_vm0, %v354_v27  ;;  %1124 = vmatpush3.bf16.msra.mxu1 %v1121_v24 }
  0xaa   : > { %1126 = vmatprep.subr.bf16.mxu1 %v1125_v28  ;;  %1144 = vmatpush3.bf16.msra.mxu0 %v1141_v41 }
  0xab   : > { %1146 = vmatprep.subr.bf16.mxu0 %v1145_v43 }
  0xad   : > { %1128 = vmatpush3.bf16.msra.mxu1 %v1125_v28 }
  0xae   : > { %1130 = vmatprep.subr.bf16.mxu1 %v1129_v31  ;;  %1148 = vmatpush3.bf16.msra.mxu0 %v1145_v43 }
  0xaf   : > { %1150 = vmatprep.subr.bf16.mxu0 %v1149_v46 }
  0xb1   : > { %1132 = vmatpush3.bf16.msra.mxu1 %v1129_v31 }
  0xb2   : > { %1134 = vmatprep.subr.bf16.mxu1 %v1133_v34  ;;  %1152 = vmatpush3.bf16.msra.mxu0 %v1149_v46 }
  0xb3   : > { %1154 = vmatprep.subr.bf16.mxu0 %v1153_v49 }
  0xb5   : > { %1136 = vmatpush3.bf16.msra.mxu1 %v1133_v34 }
  0xb6   : > { %1138 = vmatprep.subr.bf16.mxu1 %v1137_v37  ;;  %1156 = vmatpush3.bf16.msra.mxu0 %v1153_v49 }
  0xb7   : > { %1158 = vmatprep.subr.bf16.mxu0 %v1157_v52 }
  0xb9   : > { %1140 = vmatpush3.bf16.msra.mxu1 %v1137_v37 }
  0xba   : > { %1160 = vmatpush3.bf16.msra.mxu0 %v1157_v52 }
  0xbb   : > { %1162 = vmatprep.subr.bf16.mxu0 %v1161_v55 }
  0xbe   : > { %1164 = vmatpush3.bf16.msra.mxu0 %v1161_v55 }
  0xbf   : > { %1166 = vmatprep.subr.bf16.mxu0 %v1165_v58 }
  0xc2   : > { %1168 = vmatpush3.bf16.msra.mxu0 %v1165_v58 }
  0xc3   : > { %1170 = vmatprep.subr.bf16.mxu0 %v1169_v4 }
  0xc6   : > { %1172 = vmatpush3.bf16.msra.mxu0 %v1169_v4 }
 0x17c   : > { %v1022_v60 = vpop.f32.mrb[0].mxu0 }
 0x17d   : > { %v449_v61 = vadd.f32 %v1022_v60, %v932_v59  ;;  %v443_v62 = vpop.f32.mrb[1].mxu0 }
 0x17e   : > { %v444_v63 = vadd.f32 %v932_v59, %v443_v62 }
 0x17f   : > { %v453_v1 = vmax.f32 %v449_v61, 0.0 }
 0x180   : > { %v452_v0 = vmax.f32 %v444_v63, 0.0 }
 0x182   : > { %1055 = vmatprep.mubr.f32.mxu1 %v452_v0 }
 0x183   : > { %1056 = vmatmul.mubr.f32.vlgmr.msra.gmra.mrb[0].mxu1 %v453_v1 }
 0x256   : > { %v1057_v6 = vpop.f32.mrb[0].mxu1 }
 0x257   : > { %v549_v7 = vadd.f32 %v1057_v6, %v935_v5  ;;  %v543_v8 = vpop.f32.mrb[1].mxu1 }
 0x258   : > { %v544_v9 = vadd.f32 %v935_v5, %v543_v8 }
 0x259   : > { %v553_v11 = vmax.f32 %v549_v7, 0.0 }
 0x25a   : > { %v552_v10 = vmax.f32 %v544_v9, 0.0 }
 0x25c   : > { %1090 = vmatprep.mubr.f32.mxu0 %v552_v10 }
 0x25d   : > { %1091 = vmatmul.mubr.f32.vlgmr.msra.gmra.mrb[2].mxu0 %v553_v11 }
 0x32e   : > { %660 = sbr.rel (!%p1879_p5) target bundleno = 870 (0x366), region = 68 }
 0x330   : > { %v1092_v13 = vpop.f32.mrb[2].mxu0 }
 0x331   : > { %v649_v14 = vadd.f32 %v1092_v13, %v936_v12  ;;  %v643_v15 = vpop.f32.mrb[3].mxu0 }
 0x332   : > { %v644_v16 = vadd.f32 %v936_v12, %v643_v15 }
 0x333   : > { %653 = vst [vmem:[%s1802_s18 + $0x8] sm:$0xff] %v649_v14 }
 0x334   : > { %652 = vst [vmem:[%s1802_s18] sm:$0xff] %v644_v16 }
 0x335   : > { %s1889_s8 = smov (!%p663_p8, %s662_s8), 2 }
 0x336   : > { %s939_s20 = sshll.u32 %s1889_s8, 7 }
 0x337   : > { %p942_p10 = scmp.eq.s32.totalorder %s939_s20, 0 }
 0x338   : > { %s1819_s12 = sshrl.u32 (!%p942_p10), %s1889_s8, 1 }
 0x339   : > { %671 = sbr.rel (%p942_p10) target bundleno = 870 (0x366), region = 72  ;;  %p943_p1 = scmp.le.s32.totalorder (!%p942_p10), %s1819_s12, 0 }
 0x340   : > { %839 = sbr.rel (%p943_p1) target bundleno = 849 (0x351), region = 154  ;;  %s1493_s28 = smov (!%p943_p1), %s1813_s24  }
 0x341   : > { %s1497_s10 = smov (!%p943_p1), %s1802_s18   ;;  %s1501_s21 = smov (!%p943_p1), 0  }
 0x342   : > { %s1505_s22 = smov (!%p943_p1), 0  }
 0x347 LB: >> { %v735_v17 = vld [vmem:[%s1499_s10] sm:$0xff]  ;;  %v737_v18 = vld [vmem:[%s1499_s10 + $0x8] sm:$0xff]  ;;  %s739_s19 = sadd.s32 1, %s1503_s21  ;;  %s729_s22 = sadd.s32 1, %s1507_s22   ;;  %s1507_s22 = sphi %s1505_s22, %s729_s22   ;;  %s1503_s21 = sphi %s1501_s21, %s1502_s21   ;;  %s1499_s10 = sphi %s1497_s10, %s744_s10   ;;  %s1495_s28 = sphi %s1493_s28, %s745_s28  }
 0x348   : >> { %736 = vst [vmem:[%s1495_s28] sm:$0xff] %v735_v17  ;;  %738 = vst [vmem:[%s1495_s28 + $0x8] sm:$0xff] %v737_v18  ;;  %p740_p4 = scmp.ge.s32.totalorder %s739_s19, %s1819_s12  ;;  %p728_p13 = scmp.ge.s32.totalorder %s729_s22, %s1819_s12 }
 0x34a   : >> { %s1891_s19 = smov (%p740_p4, %s739_s19), 0  ;;  %731 = sbr.rel (!%p728_p13) target bundleno = 839 (0x347), region = 160 }
 0x34b   : >> { %s944_s15 = sshll.u32 %s1891_s19, 4  ;;  %s1502_s21 = smov %s1891_s19  }
 0x34c   : >> { %s744_s10 = scalar_lea.vmem %s1802_s18, %s944_s15 [#allocation9]   ;;  %s745_s28 = scalar_lea.vmem %s1813_s24, %s944_s15  }
 0x351 PF: > { %s1829_s11 = sand.u32 1, %s1889_s8   ;;  %s956_s13 = sshll.u32 %s1819_s12, 4 }
 0x352   : > { %s750_s16 = scalar_lea.vmem %s1802_s18, %s956_s13 [#allocation9]   ;;  %s752_s30 = scalar_lea.vmem %s1813_s24, %s956_s13  }
 0x353   : > { %p949_p3 = scmp.le.s32.totalorder %s1829_s11, 0 }
 0x354   : > { %s1509_s14 = smov (!%p949_p3), %s752_s30   ;;  %s1513_s17 = smov (!%p949_p3), %s750_s16  }
 0x355   : > { %853 = sbr.rel (%p949_p3) target bundleno = 870 (0x366), region = 165  ;;  %s1517_s27 = smov (!%p949_p3), 0  }
 0x356   : > { %s1521_s7 = smov (!%p949_p3), 0  }
 0x35c LB: >> { %v762_v19 = vld [vmem:[%s1515_s17] sm:$0xff]  ;;  %s764_s8 = sadd.s32 1, %s1519_s27  ;;  %s756_s7 = sadd.s32 1, %s1523_s7   ;;  %s1523_s7 = sphi %s1521_s7, %s756_s7   ;;  %s1519_s27 = sphi %s1517_s27, %s1518_s27   ;;  %s1515_s17 = sphi %s1513_s17, %s769_s17   ;;  %s1511_s14 = sphi %s1509_s14, %s770_s14  }
 0x35d   : >> { %763 = vst [vmem:[%s1511_s14] sm:$0xff] %v762_v19  ;;  %p765_p7 = scmp.ge.s32.totalorder %s764_s8, %s1829_s11  ;;  %p755_p6 = scmp.ge.s32.totalorder %s756_s7, %s1829_s11 }
 0x35f   : >> { %s1893_s8 = smov (%p765_p7, %s764_s8), 0  ;;  %758 = sbr.rel (!%p755_p6) target bundleno = 860 (0x35c), region = 171 }
 0x360   : >> { %s950_s18 = sshll.u32 %s1893_s8, 3  ;;  %s1518_s27 = smov %s1893_s8  }
 0x361   : >> { %s769_s17 = scalar_lea.vmem %s750_s16, %s950_s18 [#allocation9]   ;;  %s770_s14 = scalar_lea.vmem %s752_s30, %s950_s18  }
 0x366 PF: > { %s1881_s27 = sld [smem:[#allocation13_spill]]  ;;  %s1882_s29 = sld [smem:[#allocation14_spill]] }
 0x367   : > { %s1883_s24 = smov %s1483_s25  ;;  %s1884_s25 = smov %s1487_s26 }
 0x36c   : > { %p19_p9 = scmp.ge.s32.totalorder %s1881_s27, 6   ;;  %s1885_s26 = smov %s1882_s29 }
 0x36e   :  { %21 = sbr.rel (!%p19_p9) target bundleno = 7 (0x7), region = 182 }
 0x375   :  { %786 = vsyncpa [#allocation3], 1 }
 0x376   :  { %788 = vsyncpa [#allocation3 + $0x1], 1 }
 0x377   :  { %789 = vsyncpa [#allocation5], 1 }
 0x378   :  { %790 = vsyncpa [#allocation8], 1 }

</bundles_post_ra>
